<compile_context>
chip_gen: v7x
topology: tpu7x:2x2x1
jax: 0.10.0
libtpu: 0.0.40
codegen_flags: <defaults>
</compile_context>

<pallas_src>
import functools

import jax
import jax.numpy as jnp
from jax.experimental import pallas as pl
from jax.experimental.pallas import tpu as pltpu

EPS = 1e-12


def _round_up(x: int, m: int) -> int:
    return ((x + m - 1) // m) * m


def bert_output_kernel(x_ref, res_ref, w_ref, b_ref, gamma_ref, beta_ref, o_ref, *, mm_dtype):
    # Dense: (tm, K) @ (K, N) on the MXU.  Operands are cast to mm_dtype (bf16 by default) in VMEM,
    # accumulation is f32.
    x = x_ref[...].astype(mm_dtype)
    h = jnp.dot(x, w_ref[...], preferred_element_type=jnp.float32)
    h = h + b_ref[...].astype(jnp.float32)              # dense bias, broadcast (1, N)
    # Dropout: identity at inference time.
    # TODO(synk): training-mode dropout (p=0.1) with the hardware PRNG is not implemented.
    h = h + res_ref[...].astype(jnp.float32)            # residual add (f32)

    # LayerNorm over the last axis (biased variance, matching the torch reference).
    # Single-pass moments: E[h] and E[h^2] have no dependency between the two cross-lane reductions.
    n = h.shape[-1]
    inv_n = jnp.float32(1.0 / n)
    s1 = jnp.sum(h, axis=-1, keepdims=True)
    s2 = jnp.sum(h * h, axis=-1, keepdims=True)
    mean = s1 * inv_n
    var = jnp.maximum(s2 * inv_n - mean * mean, 0.0)
    y = (h - mean) * jax.lax.rsqrt(var + EPS)
    o_ref[...] = (gamma_ref[...].astype(jnp.float32) * y
                  + beta_ref[...].astype(jnp.float32)).astype(o_ref.dtype)


@functools.partial(jax.jit, static_argnames=("tm", "use_bf16_matmul", "vmem_limit_bytes"))
def bert_output(hidden_states, input_tensor, w, b, gamma, beta, *,
                tm: int = 512, use_bf16_matmul: bool = True,
                vmem_limit_bytes: int = 64 * 1024 * 1024):
    """BertOutput forward.

    hidden_states: (B, S, K)   output of the intermediate layer
    input_tensor:  (B, S, N)   residual input
    w: (K, N), b/gamma/beta: (N,)

    tm: row tile (tuning knob).  128 saturates v5e's 128-tall MXU; 256-512 is preferred on v6e/v7x.
        It is clamped / rounded so partial tiles are handled and bf16 sublane packing (mult of 16)
        holds.
    """
    B, S, K = hidden_states.shape
    N = input_tensor.shape[-1]
    M = B * S

    mm_dtype = jnp.bfloat16 if use_bf16_matmul else hidden_states.dtype

    # Effective row tile: big enough to feed the MXU, never bigger than the padded problem, and a
    # multiple of 16 (bf16 packs 16 rows per sublane group).
    pack = 16
    tm_eff = max(pack, min(_round_up(tm, pack), _round_up(M, pack)))
    grid_m = pl.cdiv(M, tm_eff)          # no silently-dropped partial tiles
    M_pad = grid_m * tm_eff

    x2 = hidden_states.reshape(M, K)                 # native dtype; cast to mm_dtype inside kernel
    r2 = input_tensor.reshape(M, N)                  # native dtype; cast to f32 inside kernel
    if M_pad != M:
        x2 = jnp.pad(x2, ((0, M_pad - M), (0, 0)))
        r2 = jnp.pad(r2, ((0, M_pad - M), (0, 0)))
    w2 = w.astype(mm_dtype)                          # resident weight block (one-time, small cast)
    b2 = b.reshape(1, N).astype(jnp.float32)
    g2 = gamma.reshape(1, N).astype(jnp.float32)
    be2 = beta.reshape(1, N).astype(jnp.float32)

    kernel = functools.partial(bert_output_kernel, mm_dtype=mm_dtype)

    out = pl.pallas_call(
        kernel,
        out_shape=jax.ShapeDtypeStruct((M_pad, N), hidden_states.dtype),
        grid_spec=pltpu.PrefetchScalarGridSpec(
            num_scalar_prefetch=0,
            grid=(grid_m,),
            in_specs=[
                pl.BlockSpec((tm_eff, K), lambda i: (i, 0)),   # activation tile
                pl.BlockSpec((tm_eff, N), lambda i: (i, 0)),   # residual tile
                pl.BlockSpec((K, N), lambda i: (0, 0)),        # dense weight (VMEM-resident)
                pl.BlockSpec((1, N), lambda i: (0, 0)),        # dense bias
                pl.BlockSpec((1, N), lambda i: (0, 0)),        # LN gamma
                pl.BlockSpec((1, N), lambda i: (0, 0)),        # LN beta
            ],
            out_specs=pl.BlockSpec((tm_eff, N), lambda i: (i, 0)),
        ),
        compiler_params=pltpu.CompilerParams(
            dimension_semantics=("parallel",),       # shards M across TensorCores (v7x megacore)
            vmem_limit_bytes=vmem_limit_bytes,       # large tm + resident weight needs > default scoped VMEM
        ),
    )(x2, r2, w2, b2, g2, be2)
    return out[:M].reshape(B, S, N)


def _reference(hidden_states, input_tensor, w, b, gamma, beta):
    M = hidden_states.shape[0] * hidden_states.shape[1]
    K = hidden_states.shape[-1]
    N = input_tensor.shape[-1]
    h = hidden_states.reshape(M, K).astype(jnp.float32) @ w.astype(jnp.float32) + b
    h = h + input_tensor.reshape(M, N).astype(jnp.float32)
    u = h.mean(-1, keepdims=True)
    s = ((h - u) ** 2).mean(-1, keepdims=True)
    y = gamma * (h - u) / jnp.sqrt(s + EPS) + beta
    return y.reshape(input_tensor.shape)


if __name__ == "__main__":
    # Small shapes consistent with BertOutput: Linear(intermediate -> hidden) + LayerNorm(hidden)
    batch, seq = 2, 32
    intermediate, hidden = 256, 256

    key = jax.random.PRNGKey(0)
    k1, k2, k3, k4 = jax.random.split(key, 4)

    hidden_states = jax.random.normal(k1, (batch, seq, intermediate), jnp.float32)
    input_tensor = jax.random.normal(k2, (batch, seq, hidden), jnp.float32)

    # Deterministic parameter init (initializer_range=0.02 for the Linear)
    w = 0.02 * jax.random.normal(k3, (intermediate, hidden), jnp.float32)
    b = 0.02 * jax.random.normal(k4, (hidden,), jnp.float32)
    gamma = jnp.ones((hidden,), jnp.float32)   # BertLayerNorm.weight
    beta = jnp.zeros((hidden,), jnp.float32)   # BertLayerNorm.bias

    ref = _reference(hidden_states, input_tensor, w, b, gamma, beta)

    # f32 matmul path: tight tolerance.
    out_f32 = bert_output(hidden_states, input_tensor, w, b, gamma, beta,
                          tm=256, use_bf16_matmul=False)
    jax.block_until_ready(out_f32)
    assert out_f32.shape == ref.shape
    assert jnp.allclose(out_f32, ref, atol=1e-4, rtol=1e-4), "f32 path mismatch"

    # bf16 matmul operands (f32 accumulation / LN): looser tolerance vs f32 reference.
    out_bf16 = bert_output(hidden_states, input_tensor, w, b, gamma, beta,
                           tm=512, use_bf16_matmul=True)
    jax.block_until_ready(out_bf16)
    assert jnp.allclose(out_bf16, ref, atol=2e-2, rtol=2e-2), "bf16 path mismatch"

    print("KERNEL_OK")
</pallas_src>

<mosaic_0001>
module attributes {stable_mosaic.version = 11 : i64} {
  func.func @bert_output_kernel(%arg0: i32, %arg1: memref<64x256xf32, #tpu.memory_space<vmem>>, %arg2: memref<64x256xf32, #tpu.memory_space<vmem>>, %arg3: memref<256x256xf32, #tpu.memory_space<vmem>>, %arg4: memref<1x256xf32, #tpu.memory_space<vmem>>, %arg5: memref<1x256xf32, #tpu.memory_space<vmem>>, %arg6: memref<1x256xf32, #tpu.memory_space<vmem>>, %arg7: memref<64x256xf32, #tpu.memory_space<vmem>>) attributes {dimension_semantics = [#tpu.dimension_semantics<parallel>], iteration_bounds = array<i64: 1>, scalar_prefetch = 0 : i64, scratch_operands = 0 : i64, tpu.core_type = #tpu.core_type<tc>, window_params = [{transform_indices = @transform_0, window_bounds = array<i64: 64, 256>}, {transform_indices = @transform_1, window_bounds = array<i64: 64, 256>}, {pipeline_mode = #tpu.pipeline_mode<synchronous>, transform_indices = @transform_2, window_bounds = array<i64: 256, 256>}, {pipeline_mode = #tpu.pipeline_mode<synchronous>, transform_indices = @transform_3, window_bounds = array<i64: 1, 256>}, {pipeline_mode = #tpu.pipeline_mode<synchronous>, transform_indices = @transform_4, window_bounds = array<i64: 1, 256>}, {pipeline_mode = #tpu.pipeline_mode<synchronous>, transform_indices = @transform_5, window_bounds = array<i64: 1, 256>}, {transform_indices = @transform_6, window_bounds = array<i64: 64, 256>}]} {
    %c0 = arith.constant 0 : index
    %c0_0 = arith.constant 0 : index
    %0 = vector.load %arg1[%c0, %c0_0] : memref<64x256xf32, #tpu.memory_space<vmem>>, vector<64x256xf32>
    %c0_1 = arith.constant 0 : index
    %c0_2 = arith.constant 0 : index
    %1 = vector.load %arg3[%c0_1, %c0_2] : memref<256x256xf32, #tpu.memory_space<vmem>>, vector<256x256xf32>
    %cst = arith.constant dense<0.000000e+00> : vector<64x256xf32>
    %2 = tpu.matmul %0, %1, %cst {dimension_numbers = #tpu.dot_dimension_numbers<[1], [0], [0], [1], [0, 0, 1, 1], [], []>} : vector<64x256xf32>, vector<256x256xf32>, vector<64x256xf32> -> vector<64x256xf32>
    %c0_3 = arith.constant 0 : index
    %c0_4 = arith.constant 0 : index
    %3 = vector.load %arg4[%c0_3, %c0_4] : memref<1x256xf32, #tpu.memory_space<vmem>>, vector<1x256xf32>
    %4 = vector.broadcast %3 : vector<1x256xf32> to vector<64x256xf32>
    %5 = arith.addf %2, %4 : vector<64x256xf32>
    %c0_5 = arith.constant 0 : index
    %c0_6 = arith.constant 0 : index
    %6 = vector.load %arg2[%c0_5, %c0_6] : memref<64x256xf32, #tpu.memory_space<vmem>>, vector<64x256xf32>
    %7 = arith.addf %5, %6 : vector<64x256xf32>
    %cst_7 = arith.constant dense<0.000000e+00> : vector<64xf32>
    %8 = vector.multi_reduction <add>, %7, %cst_7 [1] : vector<64x256xf32> to vector<64xf32>
    %9 = vector.shape_cast %8 : vector<64xf32> to vector<64x1xf32>
    %10 = arith.mulf %7, %7 : vector<64x256xf32>
    %cst_8 = arith.constant dense<0.000000e+00> : vector<64xf32>
    %11 = vector.multi_reduction <add>, %10, %cst_8 [1] : vector<64x256xf32> to vector<64xf32>
    %12 = vector.shape_cast %11 : vector<64xf32> to vector<64x1xf32>
    %cst_9 = arith.constant 3.906250e-03 : f32
    %13 = vector.broadcast %cst_9 : f32 to vector<64x1xf32>
    %14 = arith.mulf %9, %13 : vector<64x1xf32>
    %cst_10 = arith.constant 3.906250e-03 : f32
    %15 = vector.broadcast %cst_10 : f32 to vector<64x1xf32>
    %16 = arith.mulf %12, %15 : vector<64x1xf32>
    %17 = arith.mulf %14, %14 : vector<64x1xf32>
    %18 = arith.subf %16, %17 : vector<64x1xf32>
    %cst_11 = arith.constant 0.000000e+00 : f32
    %19 = vector.broadcast %cst_11 : f32 to vector<64x1xf32>
    %20 = arith.maximumf %18, %19 : vector<64x1xf32>
    %21 = vector.broadcast %14 : vector<64x1xf32> to vector<64x256xf32>
    %22 = arith.subf %7, %21 : vector<64x256xf32>
    %cst_12 = arith.constant 9.99999996E-13 : f32
    %23 = vector.broadcast %cst_12 : f32 to vector<64x1xf32>
    %24 = arith.addf %20, %23 : vector<64x1xf32>
    %25 = math.rsqrt %24 : vector<64x1xf32>
    %26 = vector.broadcast %25 : vector<64x1xf32> to vector<64x256xf32>
    %27 = arith.mulf %22, %26 : vector<64x256xf32>
    %c0_13 = arith.constant 0 : index
    %c0_14 = arith.constant 0 : index
    %28 = vector.load %arg5[%c0_13, %c0_14] : memref<1x256xf32, #tpu.memory_space<vmem>>, vector<1x256xf32>
    %29 = vector.broadcast %28 : vector<1x256xf32> to vector<64x256xf32>
    %30 = arith.mulf %29, %27 : vector<64x256xf32>
    %c0_15 = arith.constant 0 : index
    %c0_16 = arith.constant 0 : index
    %31 = vector.load %arg6[%c0_15, %c0_16] : memref<1x256xf32, #tpu.memory_space<vmem>>, vector<1x256xf32>
    %32 = vector.broadcast %31 : vector<1x256xf32> to vector<64x256xf32>
    %33 = arith.addf %30, %32 : vector<64x256xf32>
    %c0_17 = arith.constant 0 : index
    %c0_18 = arith.constant 0 : index
    %34 = vector.load %arg7[%c0_17, %c0_18] : memref<64x256xf32, #tpu.memory_space<vmem>>, vector<64x256xf32>
    tpu.vector_store %arg7[%c0_17, %c0_18], %33 {strides = array<i32>} : memref<64x256xf32, #tpu.memory_space<vmem>>, vector<64x256xf32>,
    return
  }
  func.func @transform_0(%arg0: i32) -> (i32, i32) {
    %c0_i32 = arith.constant 0 : i32
    %c0_i32_0 = arith.constant 0 : i32
    return %arg0, %c0_i32 : i32, i32
  }
  func.func @transform_1(%arg0: i32) -> (i32, i32) {
    %c0_i32 = arith.constant 0 : i32
    %c0_i32_0 = arith.constant 0 : i32
    return %arg0, %c0_i32 : i32, i32
  }
  func.func @transform_2(%arg0: i32) -> (i32, i32) {
    %c0_i32 = arith.constant 0 : i32
    %c0_i32_0 = arith.constant 0 : i32
    %c0_i32_1 = arith.constant 0 : i32
    return %c0_i32, %c0_i32_0 : i32, i32
  }
  func.func @transform_3(%arg0: i32) -> (i32, i32) {
    %c0_i32 = arith.constant 0 : i32
    %c0_i32_0 = arith.constant 0 : i32
    %c0_i32_1 = arith.constant 0 : i32
    return %c0_i32, %c0_i32_0 : i32, i32
  }
  func.func @transform_4(%arg0: i32) -> (i32, i32) {
    %c0_i32 = arith.constant 0 : i32
    %c0_i32_0 = arith.constant 0 : i32
    %c0_i32_1 = arith.constant 0 : i32
    return %c0_i32, %c0_i32_0 : i32, i32
  }
  func.func @transform_5(%arg0: i32) -> (i32, i32) {
    %c0_i32 = arith.constant 0 : i32
    %c0_i32_0 = arith.constant 0 : i32
    %c0_i32_1 = arith.constant 0 : i32
    return %c0_i32, %c0_i32_0 : i32, i32
  }
  func.func @transform_6(%arg0: i32) -> (i32, i32) {
    %c0_i32 = arith.constant 0 : i32
    %c0_i32_0 = arith.constant 0 : i32
    return %arg0, %c0_i32 : i32, i32
  }
}

</mosaic_0001>

<bundles_post_ra>
// kernel: bert_output.1
= control target key start
LH: loop header
LB: loop body
LE: loop exit
PB: predicated region body
PF: predicated region fallthrough
CT: control target
= control target key end

     0   :  { %11 = vsyncpa [#allocation3], 0  ;;  %s1221_s0 = inlined_call_operand.hbm [shape: f32[64,256], index: 0, kind: input, shape index: {}]   ;;  %s1222_s1 = inlined_call_operand.hbm [shape: f32[64,256], index: 1, kind: input, shape index: {}]   ;;  %s1223_s2 = inlined_call_operand.hbm [shape: f32[256,256], index: 2, kind: input, shape index: {}]   ;;  %s1224_s3 = inlined_call_operand.hbm [shape: f32[1,256], index: 3, kind: input, shape index: {}]   ;;  %s1225_s4 = inlined_call_operand.hbm [shape: f32[1,256], index: 4, kind: input, shape index: {}]   ;;  %s1226_s5 = inlined_call_operand.hbm [shape: f32[1,256], index: 5, kind: input, shape index: {}]   ;;  %s1227_s6 = inlined_call_operand.hbm [shape: f32[64,256], index: 6, kind: output, shape index: {}]  }
   0x1   :  { %12 = vsyncpa [#allocation6], 0 }
   0x2   :  { %13 = vsyncpa [#allocation9], 0 }
   0x3   :  { %14 = vsyncpa [#allocation12], 0 }
   0x4   :  { %15 = vsyncpa [#allocation4], 0  ;;  %s866_s21 = smov [#allocation5]   ;;  %s867_s23 = smov [#allocation8]  }
   0x5   :  { %s33_s22 = sshll.u32 %s866_s21, 4  ;;  %s58_s24 = sshll.u32 %s867_s23, 4  ;;  %s34_s22 = int_to_ptr.vmem [resolvable:$true] %s33_s22  ;;  %s59_s24 = int_to_ptr.vmem [resolvable:$true] %s58_s24 }
   0x6   :  { %s702_s27 = scalar_lea.hbm %s1222_s1, 2048 }
   0x7   :  { %p703_p0 = scmp.ne.s32.totalorder %s1222_s1, %s702_s27  ;;  %p706_p1 = scmp.lt.u32.totalorder %s702_s27, %s1222_s1 }
   0x9   :  { %p708_p2 = pnand %p706_p1, %p703_p0 }
   0xb   :  { %711 = shalt.err (!%p708_p2)
}
   0xc   :  { %s712_s8 = scalar_lea.vmem %s34_s22, 2048  ;;  %p717_p4 = scmp.lt.s32.totalorder %s34_s22, %s34_s22 }
   0xd   :  { %p713_p3 = scmp.ne.s32.totalorder %s34_s22, %s712_s8  ;;  %p718_p5 = scmp.lt.s32.totalorder %s712_s8, %s712_s8 }
   0xf   :  { %p719_p6 = por %p718_p5, %p717_p4 }
  0x11   :  { %p720_p7 = pnand %p719_p6, %p713_p3 }
  0x13   :  { %723 = shalt.err (!%p720_p7)
}
  0x14   :  { %s868_s9 = smov 256   ;;  %s869_s10 = smov 16  }
  0x15   :  { %39 = dma.hbm_to_vmem [thread:$0]  %s1222_s1, 2048, %s34_s22, [#allocation6], %s868_s9, %s868_s9, %s869_s10  }
  0x16   :  { %s724_s15 = scalar_lea.hbm %s1224_s3, 32 }
  0x17   :  { %p725_p8 = scmp.ne.s32.totalorder %s1224_s3, %s724_s15  ;;  %p728_p9 = scmp.lt.u32.totalorder %s724_s15, %s1224_s3 }
  0x19   :  { %p730_p10 = pnand %p728_p9, %p725_p8 }
  0x1b   :  { %733 = shalt.err (!%p730_p10)
}
  0x1c   :  { %s734_s20 = scalar_lea.vmem %s59_s24, 32  ;;  %p739_p12 = scmp.lt.s32.totalorder %s59_s24, %s59_s24 }
  0x1d   :  { %p735_p11 = scmp.ne.s32.totalorder %s59_s24, %s734_s20  ;;  %p740_p13 = scmp.lt.s32.totalorder %s734_s20, %s734_s20 }
  0x1f   :  { %p741_p0 = por %p740_p13, %p739_p12 }
  0x21   :  { %p742_p1 = pnand %p741_p0, %p735_p11 }
  0x23   :  { %745 = shalt.err (!%p742_p1)
}
  0x24   :  { %61 = dma.hbm_to_vmem [thread:$0]  %s1224_s3, 32, %s59_s24, [#allocation9]  }
  0x25   :  { %s870_s22 = smov [#allocation2]   ;;  %s871_s25 = smov [#allocation7]  }
  0x26   :  { %s21_s23 = sshll.u32 %s870_s22, 4  ;;  %s45_s26 = sshll.u32 %s871_s25, 4  ;;  %s22_s23 = int_to_ptr.vmem [resolvable:$true] %s21_s23  ;;  %s937_s26 = int_to_ptr.vmem [resolvable:$true] %s45_s26 }
  0x27   :  { %s746_s29 = scalar_lea.hbm %s1221_s0, 2048 }
  0x28   :  { %p747_p2 = scmp.ne.s32.totalorder %s1221_s0, %s746_s29  ;;  %p750_p3 = scmp.lt.u32.totalorder %s746_s29, %s1221_s0 }
  0x2a   :  { %p752_p4 = pnand %p750_p3, %p747_p2 }
  0x2c   :  { %755 = shalt.err (!%p752_p4)
}
  0x2d   :  { %s756_s3 = scalar_lea.vmem %s22_s23, 2048  ;;  %p761_p6 = scmp.lt.s32.totalorder %s22_s23, %s22_s23 }
  0x2e   :  { %p757_p5 = scmp.ne.s32.totalorder %s22_s23, %s756_s3  ;;  %p762_p7 = scmp.lt.s32.totalorder %s756_s3, %s756_s3 }
  0x30   :  { %p763_p8 = por %p762_p7, %p761_p6 }
  0x32   :  { %p764_p9 = pnand %p763_p8, %p757_p5 }
  0x34   :  { %767 = shalt.err (!%p764_p9)
}
  0x35   :  { %27 = dma.hbm_to_vmem [thread:$0]  %s1221_s0, 2048, %s22_s23, [#allocation3], %s868_s9, %s868_s9, %s869_s10  }
  0x36   :  { %s768_s15 = scalar_lea.hbm %s1223_s2, 8192 }
  0x37   :  { %p769_p10 = scmp.ne.s32.totalorder %s1223_s2, %s768_s15  ;;  %p772_p11 = scmp.lt.u32.totalorder %s768_s15, %s1223_s2 }
  0x39   :  { %p774_p12 = pnand %p772_p11, %p769_p10 }
  0x3b   :  { %777 = shalt.err (!%p774_p12)
}
  0x3c   :  { %s778_s20 = scalar_lea.vmem %s937_s26, 8192  ;;  %p783_p0 = scmp.lt.s32.totalorder %s937_s26, %s937_s26 }
  0x3d   :  { %p779_p13 = scmp.ne.s32.totalorder %s937_s26, %s778_s20  ;;  %p784_p1 = scmp.lt.s32.totalorder %s778_s20, %s778_s20 }
  0x3f   :  { %p785_p2 = por %p784_p1, %p783_p0 }
  0x41   :  { %p786_p3 = pnand %p785_p2, %p779_p13 }
  0x43   :  { %789 = shalt.err (!%p786_p3)
}
  0x44   :  { %51 = dma.hbm_to_vmem [thread:$0]  %s1223_s2, 8192, %s937_s26, [#allocation6], %s868_s9, %s868_s9, %s869_s10  }
  0x45   :  { %s872_s21 = smov [#allocation10]   ;;  %s873_s23 = smov [#allocation11]  }
  0x46   :  { %s68_s22 = sshll.u32 %s872_s21, 4  ;;  %s78_s25 = sshll.u32 %s873_s23, 4  ;;  %s69_s22 = int_to_ptr.vmem [resolvable:$true] %s68_s22  ;;  %s79_s25 = int_to_ptr.vmem [resolvable:$true] %s78_s25 }
  0x47   :  { %s790_s29 = scalar_lea.hbm %s1225_s4, 32 }
  0x48   :  { %p791_p4 = scmp.ne.s32.totalorder %s1225_s4, %s790_s29  ;;  %p794_p5 = scmp.lt.u32.totalorder %s790_s29, %s1225_s4 }
  0x4a   :  { %p796_p6 = pnand %p794_p5, %p791_p4 }
  0x4c   :  { %799 = shalt.err (!%p796_p6)
}
  0x4d   :  { %s800_s2 = scalar_lea.vmem %s69_s22, 32  ;;  %p805_p8 = scmp.lt.s32.totalorder %s69_s22, %s69_s22 }
  0x4e   :  { %p801_p7 = scmp.ne.s32.totalorder %s69_s22, %s800_s2  ;;  %p806_p9 = scmp.lt.s32.totalorder %s800_s2, %s800_s2 }
  0x50   :  { %p807_p10 = por %p806_p9, %p805_p8 }
  0x52   :  { %p808_p11 = pnand %p807_p10, %p801_p7 }
  0x54   :  { %811 = shalt.err (!%p808_p11)
}
  0x55   :  { %71 = dma.hbm_to_vmem [thread:$0]  %s1225_s4, 32, %s69_s22, [#allocation9]  }
  0x56   :  { %s812_s13 = scalar_lea.hbm %s1226_s5, 32 }
  0x57   :  { %p813_p12 = scmp.ne.s32.totalorder %s1226_s5, %s812_s13  ;;  %p816_p13 = scmp.lt.u32.totalorder %s812_s13, %s1226_s5 }
  0x59   :  { %p818_p0 = pnand %p816_p13, %p813_p12 }
  0x5b   :  { %821 = shalt.err (!%p818_p0)
}
  0x5c   :  { %s822_s18 = scalar_lea.vmem %s79_s25, 32  ;;  %p827_p2 = scmp.lt.s32.totalorder %s79_s25, %s79_s25 }
  0x5d   :  { %p823_p1 = scmp.ne.s32.totalorder %s79_s25, %s822_s18  ;;  %p828_p3 = scmp.lt.s32.totalorder %s822_s18, %s822_s18 }
  0x5f   :  { %p829_p4 = por %p828_p3, %p827_p2 }
  0x61   :  { %p830_p5 = pnand %p829_p4, %p823_p1 }
  0x63   :  { %833 = shalt.err (!%p830_p5)
}
  0x64   :  { %81 = dma.hbm_to_vmem [thread:$0]  %s1226_s5, 32, %s79_s25, [#allocation12]  }
  0x65   :  { %856 = dma.done.wait [#allocation3], 2048  }
  0x66   :  { %857 = vsyncadd [#allocation3], 4294965248 }
  0x67   :  { %858 = dma.done.wait [#allocation6], 10240  }
  0x68   :  { %859 = vsyncadd [#allocation6], 4294957056 }
  0x69   :  { %860 = dma.done.wait [#allocation9], 64  }
  0x6a   :  { %861 = vsyncadd [#allocation9], 4294967232 }
  0x6b   :  { %862 = dma.done.wait [#allocation12], 32  }
  0x6c   :  { %863 = vsyncadd [#allocation12], 4294967264  ;;  %v117_v0 = vld [vmem:[#allocation7 + $0x8] sm:$0xff]  ;;  %v119_v1 = vld [vmem:[#allocation7 + $0x18] sm:$0xff]  ;;  %s874_s5 = smov [#allocation13]  }
  0x6d   :  { %v116_v2 = vld [vmem:[#allocation7] sm:$0xff]  ;;  %v581_v3 = vpack.c.bf16 %v119_v1, %v117_v0  ;;  %v118_v4 = vld [vmem:[#allocation7 + $0x10] sm:$0xff]  ;;  %v121_v5 = vld [vmem:[#allocation7 + $0x28] sm:$0xff]  ;;  %s566_s20 = sshll.u32 %s874_s5, 4  ;;  %s567_s20 = int_to_ptr.vmem [resolvable:$true] %s566_s20 }
  0x6e   :  { %v123_v6 = vld [vmem:[#allocation7 + $0x38] sm:$0xff]  ;;  %v583_v7 = vpack.c.bf16 %v118_v4, %v116_v2  ;;  %v120_v9 = vld [vmem:[#allocation7 + $0x20] sm:$0xff]  ;;  %v122_v10 = vld [vmem:[#allocation7 + $0x30] sm:$0xff]  ;;  %s834_s0 = scalar_lea.vmem %s567_s20, 2048  ;;  %p839_p7 = scmp.lt.s32.totalorder %s567_s20, %s567_s20 }
  0x6f   :  { %v585_v8 = vpack.c.bf16 %v123_v6, %v121_v5  ;;  %v125_v11 = vld [vmem:[#allocation7 + $0x48] sm:$0xff]  ;;  %582 = vmatprep.subr.bf16.mxu0 %v581_v3  ;;  %645 = vmatprep.subr.bf16.mxu1 %v581_v3  ;;  %v127_v12 = vld [vmem:[#allocation7 + $0x58] sm:$0xff]  ;;  %v587_v13 = vpack.c.bf16 %v122_v10, %v120_v9  ;;  %v124_v15 = vld [vmem:[#allocation7 + $0x40] sm:$0xff]  ;;  %p835_p6 = scmp.ne.s32.totalorder %s567_s20, %s834_s0  ;;  %p840_p8 = scmp.lt.s32.totalorder %s834_s0, %s834_s0 }
  0x70   :  { %584 = vmatpush1.bf16.msra.mxu0 %v583_v7  ;;  %661 = vmatpush1.bf16.msra.mxu1 %v583_v7  ;;  %v589_v14 = vpack.c.bf16 %v127_v12, %v125_v11  ;;  %v126_v16 = vld [vmem:[#allocation7 + $0x50] sm:$0xff]  ;;  %v129_v17 = vld [vmem:[#allocation7 + $0x68] sm:$0xff]  ;;  %v131_v18 = vld [vmem:[#allocation7 + $0x78] sm:$0xff] }
  0x71   :  { %586 = vmatprep.subr.bf16.mxu0 %v585_v8  ;;  %646 = vmatprep.subr.bf16.mxu1 %v585_v8  ;;  %v591_v19 = vpack.c.bf16 %v126_v16, %v124_v15  ;;  %v593_v20 = vpack.c.bf16 %v131_v18, %v129_v17  ;;  %v128_v21 = vld [vmem:[#allocation7 + $0x60] sm:$0xff]  ;;  %v130_v22 = vld [vmem:[#allocation7 + $0x70] sm:$0xff]  ;;  %v133_v23 = vld [vmem:[#allocation7 + $0x88] sm:$0xff]  ;;  %p841_p9 = por %p840_p8, %p839_p7 }
  0x72   :  { %v135_v24 = vld [vmem:[#allocation7 + $0x98] sm:$0xff]  ;;  %v595_v25 = vpack.c.bf16 %v130_v22, %v128_v21  ;;  %v132_v27 = vld [vmem:[#allocation7 + $0x80] sm:$0xff]  ;;  %v134_v28 = vld [vmem:[#allocation7 + $0x90] sm:$0xff] }
  0x73   :  { %v597_v26 = vpack.c.bf16 %v135_v24, %v133_v23  ;;  %v137_v29 = vld [vmem:[#allocation7 + $0xa8] sm:$0xff]  ;;  %v139_v30 = vld [vmem:[#allocation7 + $0xb8] sm:$0xff]  ;;  %v599_v31 = vpack.c.bf16 %v134_v28, %v132_v27  ;;  %v136_v33 = vld [vmem:[#allocation7 + $0xa0] sm:$0xff]  ;;  %p842_p10 = pnand %p841_p9, %p835_p6 }
  0x74   :  { %588 = vmatpush1.bf16.msra.mxu0 %v587_v13  ;;  %662 = vmatpush1.bf16.msra.mxu1 %v587_v13  ;;  %v601_v32 = vpack.c.bf16 %v139_v30, %v137_v29  ;;  %v138_v34 = vld [vmem:[#allocation7 + $0xb0] sm:$0xff]  ;;  %v141_v35 = vld [vmem:[#allocation7 + $0xc8] sm:$0xff]  ;;  %v143_v36 = vld [vmem:[#allocation7 + $0xd8] sm:$0xff] }
  0x75   :  { %590 = vmatprep.subr.bf16.mxu0 %v589_v14  ;;  %647 = vmatprep.subr.bf16.mxu1 %v589_v14  ;;  %v603_v37 = vpack.c.bf16 %v138_v34, %v136_v33  ;;  %v140_v38 = vld [vmem:[#allocation7 + $0xc0] sm:$0xff]  ;;  %v605_v39 = vpack.c.bf16 %v143_v36, %v141_v35  ;;  %v142_v40 = vld [vmem:[#allocation7 + $0xd0] sm:$0xff]  ;;  %v101_v41 = vld [vmem:[#allocation2 + $0x8] sm:$0xff] }
  0x76   :  { %v109_v42 = vld [vmem:[#allocation2 + $0x48] sm:$0xff]  ;;  %v147_v44 = vld [vmem:[#allocation7 + $0xf8] sm:$0xff]  ;;  %256 = vmatprep.mubr.f32.mxu0 %v101_v41  ;;  %v607_v45 = vpack.c.bf16 %v142_v40, %v140_v38  ;;  %v144_v47 = vld [vmem:[#allocation7 + $0xe0] sm:$0xff] }
  0x77   :  { %v145_v43 = vld [vmem:[#allocation7 + $0xe8] sm:$0xff]  ;;  %280 = vmatprep.mubr.f32.mxu1 %v109_v42  ;;  %v146_v48 = vld [vmem:[#allocation7 + $0xf0] sm:$0xff]  ;;  %v151_v50 = vld [vmem:[#allocation7 + $0x118] sm:$0xff] }
  0x78   :  { %592 = vmatpush1.bf16.msra.mxu0 %v591_v19  ;;  %663 = vmatpush1.bf16.msra.mxu1 %v591_v19  ;;  %v609_v46 = vpack.c.bf16 %v147_v44, %v145_v43  ;;  %v149_v49 = vld [vmem:[#allocation7 + $0x108] sm:$0xff]  ;;  %v611_v51 = vpack.c.bf16 %v146_v48, %v144_v47  ;;  %v148_v53 = vld [vmem:[#allocation7 + $0x100] sm:$0xff]  ;;  %v150_v54 = vld [vmem:[#allocation7 + $0x110] sm:$0xff]  ;;  %v182_v48 = vlaneseq }
  0x79   :  { %594 = vmatprep.subr.bf16.mxu0 %v593_v20  ;;  %648 = vmatprep.subr.bf16.mxu1 %v593_v20  ;;  %v613_v52 = vpack.c.bf16 %v151_v50, %v149_v49  ;;  %v153_v55 = vld [vmem:[#allocation7 + $0x128] sm:$0xff]  ;;  %v155_v56 = vld [vmem:[#allocation7 + $0x138] sm:$0xff]  ;;  %v615_v57 = vpack.c.bf16 %v150_v54, %v148_v53  ;;  %v152_v59 = vld [vmem:[#allocation7 + $0x120] sm:$0xff] }
  0x7a   :  { %v617_v58 = vpack.c.bf16 %v155_v56, %v153_v55  ;;  %v154_v60 = vld [vmem:[#allocation7 + $0x130] sm:$0xff]  ;;  %v157_v61 = vld [vmem:[#allocation7 + $0x148] sm:$0xff]  ;;  %v159_v62 = vld [vmem:[#allocation7 + $0x158] sm:$0xff]  ;;  %v183_v49 = vshrl.u32 %v182_v48, 7 }
  0x7b   :  { %v619_v63 = vpack.c.bf16 %v154_v60, %v152_v59  ;;  %v621_v0 = vpack.c.bf16 %v159_v62, %v157_v61  ;;  %v156_v1 = vld [vmem:[#allocation7 + $0x140] sm:$0xff]  ;;  %v158_v2 = vld [vmem:[#allocation7 + $0x150] sm:$0xff]  ;;  %v161_v3 = vld [vmem:[#allocation7 + $0x168] sm:$0xff] }
  0x7c   :  { %596 = vmatpush1.bf16.msra.mxu0 %v595_v25  ;;  %664 = vmatpush1.bf16.msra.mxu1 %v595_v25  ;;  %v163_v4 = vld [vmem:[#allocation7 + $0x178] sm:$0xff]  ;;  %v623_v5 = vpack.c.bf16 %v158_v2, %v156_v1  ;;  %v160_v7 = vld [vmem:[#allocation7 + $0x160] sm:$0xff]  ;;  %v162_v8 = vld [vmem:[#allocation7 + $0x170] sm:$0xff]  ;;  %v998_v50 = vsub.s32 0, %v183_v49 }
  0x7d   :  { %598 = vmatprep.subr.bf16.mxu0 %v597_v26  ;;  %649 = vmatprep.subr.bf16.mxu1 %v597_v26  ;;  %v625_v6 = vpack.c.bf16 %v163_v4, %v161_v3  ;;  %v165_v9 = vld [vmem:[#allocation7 + $0x188] sm:$0xff]  ;;  %v167_v10 = vld [vmem:[#allocation7 + $0x198] sm:$0xff]  ;;  %v627_v11 = vpack.c.bf16 %v162_v8, %v160_v7  ;;  %v164_v13 = vld [vmem:[#allocation7 + $0x180] sm:$0xff] }
  0x7e   :  { %v629_v12 = vpack.c.bf16 %v167_v10, %v165_v9  ;;  %v166_v14 = vld [vmem:[#allocation7 + $0x190] sm:$0xff]  ;;  %v169_v15 = vld [vmem:[#allocation7 + $0x1a8] sm:$0xff]  ;;  %v171_v16 = vld [vmem:[#allocation7 + $0x1b8] sm:$0xff] }
  0x7f   :  { %v631_v17 = vpack.c.bf16 %v166_v14, %v164_v13  ;;  %v633_v18 = vpack.c.bf16 %v171_v16, %v169_v15  ;;  %v168_v19 = vld [vmem:[#allocation7 + $0x1a0] sm:$0xff]  ;;  %v170_v20 = vld [vmem:[#allocation7 + $0x1b0] sm:$0xff]  ;;  %v173_v21 = vld [vmem:[#allocation7 + $0x1c8] sm:$0xff] }
  0x80   :  { %600 = vmatpush1.bf16.msra.mxu0 %v599_v31  ;;  %665 = vmatpush1.bf16.msra.mxu1 %v599_v31  ;;  %v175_v22 = vld [vmem:[#allocation7 + $0x1d8] sm:$0xff]  ;;  %v635_v23 = vpack.c.bf16 %v170_v20, %v168_v19  ;;  %v172_v25 = vld [vmem:[#allocation7 + $0x1c0] sm:$0xff]  ;;  %v174_v26 = vld [vmem:[#allocation7 + $0x1d0] sm:$0xff] }
  0x81   :  { %602 = vmatprep.subr.bf16.mxu0 %v601_v32  ;;  %650 = vmatprep.subr.bf16.mxu1 %v601_v32  ;;  %v637_v24 = vpack.c.bf16 %v175_v22, %v173_v21  ;;  %v177_v27 = vld [vmem:[#allocation7 + $0x1e8] sm:$0xff]  ;;  %v179_v28 = vld [vmem:[#allocation7 + $0x1f8] sm:$0xff]  ;;  %v639_v29 = vpack.c.bf16 %v174_v26, %v172_v25  ;;  %v176_v31 = vld [vmem:[#allocation7 + $0x1e0] sm:$0xff] }
  0x82   :  { %v641_v30 = vpack.c.bf16 %v179_v28, %v177_v27  ;;  %v178_v32 = vld [vmem:[#allocation7 + $0x1f0] sm:$0xff]  ;;  %v100_v34 = vld [vmem:[#allocation2] sm:$0xff]  ;;  %v111_v36 = vld [vmem:[#allocation2 + $0x58] sm:$0xff] }
  0x83   :  { %v643_v33 = vpack.c.bf16 %v178_v32, %v176_v31  ;;  %v108_v35 = vld [vmem:[#allocation2 + $0x40] sm:$0xff]  ;;  %v110_v38 = vld [vmem:[#allocation2 + $0x50] sm:$0xff]  ;;  %v105_v40 = vld [vmem:[#allocation2 + $0x28] sm:$0xff] }
  0x84   :  { %604 = vmatpush1.bf16.msra.mxu0 %v603_v37  ;;  %666 = vmatpush1.bf16.msra.mxu1 %v603_v37  ;;  %v103_v37 = vld [vmem:[#allocation2 + $0x18] sm:$0xff]  ;;  %v113_v41 = vld [vmem:[#allocation2 + $0x68] sm:$0xff]  ;;  %v104_v42 = vld [vmem:[#allocation2 + $0x20] sm:$0xff] }
  0x85   :  { %606 = vmatprep.subr.bf16.mxu0 %v605_v39  ;;  %651 = vmatprep.subr.bf16.mxu1 %v605_v39  ;;  %v102_v39 = vld [vmem:[#allocation2 + $0x10] sm:$0xff]  ;;  %v112_v43 = vld [vmem:[#allocation2 + $0x60] sm:$0xff]  ;;  %v107_v44 = vld [vmem:[#allocation2 + $0x38] sm:$0xff] }
  0x86   :  { %v114_v47 = vld [vmem:[#allocation2 + $0x70] sm:$0xff]  ;;  %v305_v56 = vld [vmem:[#allocation5] sm:$0xff]  ;;  %v306_v61 = vld [vmem:[#allocation5 + $0x8] sm:$0xff] }
  0x87   :  { %v314_v3 = vld [vmem:[#allocation5 + $0x48] sm:$0xff]  ;;  %v307_v8 = vld [vmem:[#allocation5 + $0x10] sm:$0xff]  ;;  %v316_v13 = vld [vmem:[#allocation5 + $0x58] sm:$0xff] }
  0x88   :  { %608 = vmatpush1.bf16.msra.mxu0 %v607_v45  ;;  %667 = vmatpush1.bf16.msra.mxu1 %v607_v45  ;;  %v115_v45 = vld [vmem:[#allocation2 + $0x78] sm:$0xff] }
  0x89   :  { %610 = vmatprep.subr.bf16.mxu0 %v609_v46  ;;  %652 = vmatprep.subr.bf16.mxu1 %v609_v46  ;;  %v106_v46 = vld [vmem:[#allocation2 + $0x30] sm:$0xff]  ;;  %v308_v15 = vld [vmem:[#allocation5 + $0x18] sm:$0xff] }
  0x8c   :  { %612 = vmatpush1.bf16.msra.mxu0 %v611_v51  ;;  %668 = vmatpush1.bf16.msra.mxu1 %v611_v51  ;;  %v180_v51 = vld [vmem:[#allocation8] sm:$0x3] }
  0x8d   :  { %614 = vmatprep.subr.bf16.mxu0 %v613_v52  ;;  %653 = vmatprep.subr.bf16.mxu1 %v613_v52  ;;  %v1000_v52 = vsub.s32 1, %v183_v49  ;;  %v1003_v53 = vrot.slane %v180_v51, %v998_v50 }
  0x8f   :  { %v1006_v54 = vrot.slane %v180_v51, %v1000_v52 }
  0x90   :  { %616 = vmatpush1.bf16.msra.mxu0 %v615_v57  ;;  %669 = vmatpush1.bf16.msra.mxu1 %v615_v57 }
  0x91   :  { %618 = vmatprep.subr.bf16.mxu0 %v617_v58  ;;  %654 = vmatprep.subr.bf16.mxu1 %v617_v58 }
  0x94   :  { %620 = vmatpush1.bf16.msra.mxu0 %v619_v63  ;;  %670 = vmatpush1.bf16.msra.mxu1 %v619_v63  ;;  %v313_v63 = vld [vmem:[#allocation5 + $0x40] sm:$0xff] }
  0x95   :  { %622 = vmatprep.subr.bf16.mxu0 %v621_v0  ;;  %655 = vmatprep.subr.bf16.mxu1 %v621_v0 }
  0x98   :  { %624 = vmatpush1.bf16.msra.mxu0 %v623_v5  ;;  %671 = vmatpush1.bf16.msra.mxu1 %v623_v5 }
  0x99   :  { %626 = vmatprep.subr.bf16.mxu0 %v625_v6  ;;  %656 = vmatprep.subr.bf16.mxu1 %v625_v6  ;;  %v315_v6 = vld [vmem:[#allocation5 + $0x50] sm:$0xff] }
  0x9c   :  { %628 = vmatpush1.bf16.msra.mxu0 %v627_v11  ;;  %672 = vmatpush1.bf16.msra.mxu1 %v627_v11 }
  0x9d   :  { %630 = vmatprep.subr.bf16.mxu0 %v629_v12  ;;  %657 = vmatprep.subr.bf16.mxu1 %v629_v12 }
  0xa0   :  { %632 = vmatpush1.bf16.msra.mxu0 %v631_v17  ;;  %673 = vmatpush1.bf16.msra.mxu1 %v631_v17 }
  0xa1   :  { %634 = vmatprep.subr.bf16.mxu0 %v633_v18  ;;  %658 = vmatprep.subr.bf16.mxu1 %v633_v18 }
  0xa4   :  { %636 = vmatpush1.bf16.msra.mxu0 %v635_v23  ;;  %674 = vmatpush1.bf16.msra.mxu1 %v635_v23 }
  0xa5   :  { %638 = vmatprep.subr.bf16.mxu0 %v637_v24  ;;  %659 = vmatprep.subr.bf16.mxu1 %v637_v24 }
  0xa8   :  { %640 = vmatpush1.bf16.msra.mxu0 %v639_v29  ;;  %675 = vmatpush1.bf16.msra.mxu1 %v639_v29 }
  0xa9   :  { %642 = vmatprep.subr.bf16.mxu0 %v641_v30  ;;  %660 = vmatprep.subr.bf16.mxu1 %v641_v30 }
  0xac   :  { %644 = vmatpush1.bf16.msra.mxu0 %v643_v33  ;;  %676 = vmatpush1.bf16.msra.mxu1 %v643_v33 }
  0xaf   :  { %257 = vmatmul.mubr.f32.vlgmr.msra.gmra.mrb[0].mxu0 %v100_v34  ;;  %281 = vmatmul.mubr.f32.vlgmr.msra.gmra.mrb[0].mxu1 %v108_v35  ;;  %v309_v35 = vld [vmem:[#allocation5 + $0x20] sm:$0xff] }
  0xb0   :  { %286 = vmatprep.mubr.f32.mxu1 %v111_v36  ;;  %262 = vmatprep.mubr.f32.mxu0 %v103_v37 }
  0xb3   :  { %287 = vmatmul.mubr.f32.gmra.mrb[2].mxu1 %v110_v38  ;;  %263 = vmatmul.mubr.f32.gmra.mrb[2].mxu0 %v102_v39 }
  0xb4   :  { %268 = vmatprep.mubr.f32.mxu0 %v105_v40  ;;  %292 = vmatprep.mubr.f32.mxu1 %v113_v41  ;;  %v310_v40 = vld [vmem:[#allocation5 + $0x28] sm:$0xff] }
  0xb7   :  { %269 = vmatmul.mubr.f32.gmra.mrb[4].mxu0 %v104_v42  ;;  %293 = vmatmul.mubr.f32.gmra.mrb[4].mxu1 %v112_v43 }
  0xb8   :  { %274 = vmatprep.mubr.f32.mxu0 %v107_v44  ;;  %298 = vmatprep.mubr.f32.mxu1 %v115_v45 }
  0xbb   :  { %275 = vmatmul.mubr.f32.gmra.mrb[6].mxu0 %v106_v46  ;;  %299 = vmatmul.mubr.f32.gmra.mrb[6].mxu1 %v114_v47 }
 0x182   :  { %v258_v55 = vpop.f32.mrb[0].mxu0  ;;  %v282_v57 = vpop.f32.mrb[0].mxu1 }
 0x183   :  { %v259_v58 = vadd.f32 %v258_v55, %v1003_v53  ;;  %v283_v59 = vadd.f32 %v282_v57, %v1003_v53  ;;  %v260_v60 = vpop.f32.mrb[1].mxu0  ;;  %v284_v62 = vpop.f32.mrb[1].mxu1  ;;  %v317_v57 = vld [vmem:[#allocation5 + $0x60] sm:$0xff] }
 0x184   :  { %v261_v0 = vadd.f32 %v260_v60, %v1006_v54  ;;  %v285_v1 = vadd.f32 %v284_v62, %v1006_v54  ;;  %v311_v60 = vld [vmem:[#allocation5 + $0x30] sm:$0xff] }
 0x185   :  { %v1012_v2 = vadd.f32 %v305_v56, %v259_v58  ;;  %v1016_v9 = vadd.f32 %v313_v63, %v283_v59  ;;  %v318_v59 = vld [vmem:[#allocation5 + $0x68] sm:$0xff] }
 0x186   :  { %v1014_v4 = vadd.f32 %v306_v61, %v261_v0  ;;  %v288_v5 = vpop.f32.mrb[2].mxu1  ;;  %v264_v7 = vpop.f32.mrb[2].mxu0  ;;  %v1020_v16 = vadd.f32 %v314_v3, %v285_v1  ;;  %v312_v61 = vld [vmem:[#allocation5 + $0x38] sm:$0xff] }
 0x187   :  { %v289_v10 = vadd.f32 %v288_v5, %v1003_v53  ;;  %v265_v11 = vadd.f32 %v264_v7, %v1003_v53  ;;  %v290_v12 = vpop.f32.mrb[3].mxu1  ;;  %v266_v14 = vpop.f32.mrb[3].mxu0  ;;  %v361_v28 = vmul.f32 %v1012_v2, %v1012_v2  ;;  %v369_v42 = vmul.f32 %v1016_v9, %v1016_v9 }
 0x188   :  { %v291_v17 = vadd.f32 %v290_v12, %v1006_v54  ;;  %v267_v18 = vadd.f32 %v266_v14, %v1006_v54  ;;  %v337_v19 = vadd.f32 %v1014_v4, %v1012_v2  ;;  %v349_v31 = vadd.f32 %v1020_v16, %v1016_v9 }
 0x189   :  { %v1026_v20 = vadd.f32 %v315_v6, %v289_v10  ;;  %v1028_v21 = vadd.f32 %v307_v8, %v265_v11  ;;  %v362_v33 = vmul.f32 %v1014_v4, %v1014_v4  ;;  %v370_v47 = vmul.f32 %v1020_v16, %v1020_v16  ;;  %v319_v8 = vld [vmem:[#allocation5 + $0x70] sm:$0xff]  ;;  %v320_v11 = vld [vmem:[#allocation5 + $0x78] sm:$0xff] }
 0x18a   :  { %v1030_v22 = vadd.f32 %v316_v13, %v291_v17  ;;  %v1032_v23 = vadd.f32 %v308_v15, %v267_v18  ;;  %338 = vadd.xlane.f32.xlu0 %v337_v19  ;;  %v270_v24 = vpop.f32.mrb[4].mxu0  ;;  %v294_v25 = vpop.f32.mrb[4].mxu1 }
 0x18b   :  { %v272_v26 = vpop.f32.mrb[5].mxu0  ;;  %v363_v27 = vmul.f32 %v1028_v21, %v1028_v21  ;;  %v296_v29 = vpop.f32.mrb[5].mxu1  ;;  %v271_v34 = vadd.f32 %v270_v24, %v1003_v53  ;;  %v377_v44 = vadd.f32 %v362_v33, %v361_v28  ;;  %v371_v45 = vmul.f32 %v1026_v20, %v1026_v20 }
 0x18c   :  { %v352_v30 = vadd.f32 %v1030_v22, %v1026_v20  ;;  %v364_v32 = vmul.f32 %v1032_v23, %v1032_v23  ;;  %v273_v36 = vadd.f32 %v272_v26, %v1006_v54  ;;  %v372_v46 = vmul.f32 %v1030_v22, %v1030_v22 }
 0x18d   :  { %v1056_v48 = vadd.f32 %v309_v35, %v271_v34  ;;  %v295_v49 = vadd.f32 %v294_v25, %v1003_v53  ;;  %v297_v51 = vadd.f32 %v296_v29, %v1006_v54  ;;  %v389_v63 = vadd.f32 %v370_v47, %v369_v42 }
 0x18e   :  { %353 = vadd.xlane.f32.xlu1 %v352_v30  ;;  %350 = vadd.xlane.f32.xlu0 %v349_v31  ;;  %v380_v37 = vadd.f32 %v364_v32, %v363_v27  ;;  %v276_v38 = vpop.f32.mrb[6].mxu0  ;;  %v300_v39 = vpop.f32.mrb[6].mxu1  ;;  %v1060_v55 = vadd.f32 %v310_v40, %v273_v36  ;;  %v392_v62 = vadd.f32 %v372_v46, %v371_v45 }
 0x18f   :  { %v278_v41 = vpop.f32.mrb[7].mxu0  ;;  %v302_v43 = vpop.f32.mrb[7].mxu1  ;;  %v277_v56 = vadd.f32 %v276_v38, %v1003_v53  ;;  %v1064_v0 = vadd.f32 %v317_v57, %v295_v49  ;;  %v1066_v1 = vadd.f32 %v318_v59, %v297_v51  ;;  %v301_v3 = vadd.f32 %v300_v39, %v1003_v53 }
 0x190   :  { %v279_v58 = vadd.f32 %v278_v41, %v1006_v54  ;;  %v303_v5 = vadd.f32 %v302_v43, %v1006_v54  ;;  %v343_v10 = vadd.f32 %v1060_v55, %v1056_v48  ;;  %v340_v12 = vadd.f32 %v1032_v23, %v1028_v21 }
 0x191   :  { %v1070_v6 = vadd.f32 %v311_v60, %v277_v56  ;;  %v1078_v13 = vadd.f32 %v319_v8, %v301_v3  ;;  %v355_v54 = vadd.f32 %v1066_v1, %v1064_v0  ;;  %v365_v15 = vmul.f32 %v1056_v48, %v1056_v48 }
 0x192   :  { %381 = vadd.xlane.f32.xlu1 %v380_v37  ;;  %378 = vadd.xlane.f32.xlu0 %v377_v44  ;;  %v1072_v7 = vadd.f32 %v312_v61, %v279_v58  ;;  %v1080_v14 = vadd.f32 %v320_v11, %v303_v5  ;;  %v366_v17 = vmul.f32 %v1060_v55, %v1060_v55 }
 0x193   :  { %v367_v19 = vmul.f32 %v1070_v6, %v1070_v6  ;;  %v373_v26 = vmul.f32 %v1064_v0, %v1064_v0  ;;  %v374_v27 = vmul.f32 %v1066_v1, %v1066_v1  ;;  %v375_v30 = vmul.f32 %v1078_v13, %v1078_v13 }
 0x194   :  { %v346_v53 = vadd.f32 %v1072_v7, %v1070_v6  ;;  %v358_v18 = vadd.f32 %v1080_v14, %v1078_v13  ;;  %v383_v24 = vadd.f32 %v366_v17, %v365_v15  ;;  %v368_v25 = vmul.f32 %v1072_v7, %v1072_v7  ;;  %v517_v15 = vld [vmem:[#allocation11] sm:$0x3] }
 0x195   :  { %v395_v29 = vadd.f32 %v374_v27, %v373_v26  ;;  %v376_v31 = vmul.f32 %v1080_v14, %v1080_v14 }
 0x196   :  { %393 = vadd.xlane.f32.xlu1 %v392_v62  ;;  %390 = vadd.xlane.f32.xlu0 %v389_v63  ;;  %v386_v28 = vadd.f32 %v368_v25, %v367_v19 }
 0x197   :  { %v398_v32 = vadd.f32 %v376_v31, %v375_v30 }
 0x19a   :  { %344 = vadd.xlane.f32.xlu1 %v343_v10  ;;  %341 = vadd.xlane.f32.xlu0 %v340_v12 }
 0x19e   :  { %347 = vadd.xlane.f32.xlu1 %v346_v53  ;;  %356 = vadd.xlane.f32.xlu0 %v355_v54  ;;  %v489_v54 = vld [vmem:[#allocation10] sm:$0x3] }
 0x19f   :  { %v1119_v19 = vrot.slane %v489_v54, %v998_v50 }
 0x1a2   :  { %359 = vadd.xlane.f32.xlu1 %v358_v18  ;;  %384 = vadd.xlane.f32.xlu0 %v383_v24  ;;  %v1122_v24 = vrot.slane %v517_v15, %v998_v50 }
 0x1a6   :  { %387 = vadd.xlane.f32.xlu1 %v386_v28  ;;  %396 = vadd.xlane.f32.xlu0 %v395_v29  ;;  %v1127_v29 = vrot.slane %v489_v54, %v1000_v52 }
 0x1aa   :  { %399 = vadd.xlane.f32.xlu1 %v398_v32 }
 0x217   :  { %v339_v33 = vpop.xlane.xlu0 %338 }
 0x218   :  { %v401_v36 = vmul.f32 0.00390625, %v339_v33  ;;  %v1134_v33 = vrot.slane %v517_v15, %v1000_v52 }
 0x21a   :  { %v417_v41 = vmul.f32 %v401_v36, %v401_v36  ;;  %v441_v50 = vsub.f32 %v1012_v2, %v401_v36 }
 0x21b   :  { %v354_v34 = vpop.xlane.xlu1 %353  ;;  %v351_v35 = vpop.xlane.xlu0 %350 }
 0x21c   :  { %v1104_v37 = vmul.f32 0.00390625, %v354_v34  ;;  %v1106_v40 = vmul.f32 0.00390625, %v351_v35  ;;  %v442_v34 = vsub.f32 %v1014_v4, %v401_v36 }
 0x21e   :  { %v422_v44 = vmul.f32 %v1104_v37, %v1104_v37  ;;  %v421_v51 = vmul.f32 %v1106_v40, %v1106_v40 }
 0x21f   :  { %v382_v38 = vpop.xlane.xlu1 %381  ;;  %v379_v39 = vpop.xlane.xlu0 %378 }
 0x220   :  { %v409_v42 = vmul.f32 0.00390625, %v379_v39  ;;  %v410_v10 = vmul.f32 0.00390625, %v382_v38  ;;  %v451_v39 = vsub.f32 %v1026_v20, %v1104_v37 }
 0x222   :  { %v425_v43 = vsub.f32 %v409_v42, %v417_v41  ;;  %v452_v41 = vsub.f32 %v1030_v22, %v1104_v37  ;;  %v449_v22 = vsub.f32 %v1016_v9, %v1106_v40  ;;  %v450_v37 = vsub.f32 %v1020_v16, %v1106_v40 }
 0x223   :  { %v394_v45 = vpop.xlane.xlu1 %393  ;;  %v391_v46 = vpop.xlane.xlu0 %390 }
 0x224   :  { %v433_v47 = vmax.f32 %v425_v43, 0.0  ;;  %v414_v49 = vmul.f32 0.00390625, %v394_v45  ;;  %v413_v56 = vmul.f32 0.00390625, %v391_v46 }
 0x226   :  { %v457_v57 = vadd.f32 1e-12, %v433_v47  ;;  %v430_v58 = vsub.f32 %v414_v49, %v422_v44  ;;  %v429_v59 = vsub.f32 %v413_v56, %v421_v51 }
 0x227   :  { %v345_v60 = vpop.xlane.xlu1 %344  ;;  %v342_v61 = vpop.xlane.xlu0 %341 }
 0x228   :  { %686 = vrsqrt.f32 %v457_v57  ;;  %v438_v62 = vmax.f32 %v430_v58, 0.0  ;;  %v437_v63 = vmax.f32 %v429_v59, 0.0  ;;  %v1112_v3 = vmul.f32 0.00390625, %v342_v61 }
 0x229   :  { %v1116_v17 = vmul.f32 0.00390625, %v345_v60 }
 0x22a   :  { %v462_v5 = vadd.f32 1e-12, %v438_v62  ;;  %v461_v8 = vadd.f32 1e-12, %v437_v63  ;;  %v418_v11 = vmul.f32 %v1112_v3, %v1112_v3 }
 0x22b   :  { %v348_v12 = vpop.xlane.xlu1 %347  ;;  %v357_v53 = vpop.xlane.xlu0 %356  ;;  %v419_v31 = vmul.f32 %v1116_v17, %v1116_v17 }
 0x22c   :  { %688 = vrsqrt.f32 %v462_v5  ;;  %v426_v18 = vsub.f32 %v410_v10, %v418_v11  ;;  %v1124_v26 = vmul.f32 0.00390625, %v348_v12  ;;  %v1129_v30 = vmul.f32 0.00390625, %v357_v53 }
 0x22d   :  { %690 = vrsqrt.f32 %v461_v8 }
 0x22e   :  { %v434_v25 = vmax.f32 %v426_v18, 0.0  ;;  %v420_v52 = vmul.f32 %v1124_v26, %v1124_v26  ;;  %v423_v47 = vmul.f32 %v1129_v30, %v1129_v30 }
 0x22f   :  { %v360_v27 = vpop.xlane.xlu1 %359  ;;  %v385_v28 = vpop.xlane.xlu0 %384 }
 0x230   :  { %v411_v32 = vmul.f32 0.00390625, %v385_v28  ;;  %v458_v35 = vadd.f32 1e-12, %v434_v25  ;;  %v1142_v42 = vmul.f32 0.00390625, %v360_v27  ;;  %v443_v25 = vsub.f32 %v1028_v21, %v1112_v3 }
 0x232   :  { %v687_v38 = vpop.eup %686  ;;  %v427_v43 = vsub.f32 %v411_v32, %v419_v31  ;;  %692 = vrsqrt.f32 %v458_v35  ;;  %v424_v60 = vmul.f32 %v1142_v42, %v1142_v42 }
 0x233   :  { %v473_v44 = vmul.f32 %v687_v38, %v441_v50  ;;  %v474_v45 = vmul.f32 %v687_v38, %v442_v34  ;;  %v388_v2 = vpop.xlane.xlu1 %387  ;;  %v397_v46 = vpop.xlane.xlu0 %396  ;;  %v444_v38 = vsub.f32 %v1032_v23, %v1112_v3  ;;  %v446_v23 = vsub.f32 %v1060_v55, %v1116_v17 }
 0x234   :  { %v435_v4 = vmax.f32 %v427_v43, 0.0  ;;  %v412_v36 = vmul.f32 0.00390625, %v388_v2  ;;  %v415_v20 = vmul.f32 0.00390625, %v397_v46  ;;  %v445_v2 = vsub.f32 %v1056_v48, %v1116_v17 }
 0x235   :  { %v501_v49 = vmul.f32 %v1119_v19, %v473_v44  ;;  %v502_v51 = vmul.f32 %v1127_v29, %v474_v45 }
 0x236   :  { %v689_v56 = vpop.eup %688  ;;  %v459_v57 = vadd.f32 1e-12, %v435_v4  ;;  %v428_v58 = vsub.f32 %v412_v36, %v420_v52  ;;  %v431_v59 = vsub.f32 %v415_v20, %v423_v47  ;;  %v447_v20 = vsub.f32 %v1070_v6, %v1124_v26 }
 0x237   :  { %v691_v61 = vpop.eup %690  ;;  %v529_v62 = vadd.f32 %v1122_v24, %v501_v49  ;;  %v530_v63 = vadd.f32 %v1134_v33, %v502_v51  ;;  %v483_v9 = vmul.f32 %v689_v56, %v451_v39  ;;  %v484_v5 = vmul.f32 %v689_v56, %v452_v41  ;;  %v400_v8 = vpop.xlane.xlu1 %399 }
 0x238   :  { %v481_v16 = vmul.f32 %v691_v61, %v449_v22  ;;  %v482_v40 = vmul.f32 %v691_v61, %v450_v37  ;;  %694 = vrsqrt.f32 %v459_v57  ;;  %v436_v10 = vmax.f32 %v428_v58, 0.0 }
 0x239   :  { %545 = vst [vmem:[#allocation13] sm:$0xff] %v529_v62  ;;  %546 = vst [vmem:[#allocation13 + $0x8] sm:$0xff] %v530_v63  ;;  %v511_v11 = vmul.f32 %v1119_v19, %v483_v9  ;;  %v512_v12 = vmul.f32 %v1127_v29, %v484_v5  ;;  %v439_v53 = vmax.f32 %v431_v59, 0.0  ;;  %v416_v54 = vmul.f32 0.00390625, %v400_v8 }
 0x23a   :  { %v509_v15 = vmul.f32 %v1119_v19, %v481_v16  ;;  %v510_v18 = vmul.f32 %v1127_v29, %v482_v40  ;;  %v460_v27 = vadd.f32 1e-12, %v436_v10  ;;  %v448_v22 = vsub.f32 %v1072_v7, %v1124_v26 }
 0x23b   :  { %v539_v28 = vadd.f32 %v1122_v24, %v511_v11  ;;  %v540_v31 = vadd.f32 %v1134_v33, %v512_v12  ;;  %v463_v32 = vadd.f32 1e-12, %v439_v53  ;;  %v432_v50 = vsub.f32 %v416_v54, %v424_v60 }
 0x23c   :  { %v537_v34 = vadd.f32 %v1122_v24, %v509_v15  ;;  %v538_v35 = vadd.f32 %v1134_v33, %v510_v18  ;;  %696 = vrsqrt.f32 %v460_v27  ;;  %v693_v39 = vpop.eup %692  ;;  %v453_v37 = vsub.f32 %v1064_v0, %v1129_v30 }
 0x23d   :  { %555 = vst [vmem:[#allocation13 + $0x50] sm:$0xff] %v539_v28  ;;  %556 = vst [vmem:[#allocation13 + $0x58] sm:$0xff] %v540_v31  ;;  %698 = vrsqrt.f32 %v463_v32  ;;  %v440_v21 = vmax.f32 %v432_v50, 0.0  ;;  %v475_v41 = vmul.f32 %v693_v39, %v443_v25  ;;  %v476_v43 = vmul.f32 %v693_v39, %v444_v38 }
 0x23e   :  { %553 = vst [vmem:[#allocation13 + $0x40] sm:$0xff] %v537_v34  ;;  %554 = vst [vmem:[#allocation13 + $0x48] sm:$0xff] %v538_v35  ;;  %v454_v49 = vsub.f32 %v1066_v1, %v1129_v30  ;;  %v455_v0 = vsub.f32 %v1078_v13, %v1142_v42  ;;  %v456_v1 = vsub.f32 %v1080_v14, %v1142_v42 }
 0x23f   :  { %v464_v44 = vadd.f32 1e-12, %v440_v21  ;;  %v503_v45 = vmul.f32 %v1119_v19, %v475_v41  ;;  %v504_v52 = vmul.f32 %v1127_v29, %v476_v43 }
 0x241   :  { %700 = vrsqrt.f32 %v464_v44  ;;  %v531_v46 = vadd.f32 %v1122_v24, %v503_v45  ;;  %v532_v4 = vadd.f32 %v1134_v33, %v504_v52 }
 0x242   :  { %v695_v3 = vpop.eup %694 }
 0x243   :  { %v477_v36 = vmul.f32 %v695_v3, %v445_v2  ;;  %v478_v47 = vmul.f32 %v695_v3, %v446_v23  ;;  %547 = vst [vmem:[#allocation13 + $0x10] sm:$0xff] %v531_v46  ;;  %548 = vst [vmem:[#allocation13 + $0x18] sm:$0xff] %v532_v4 }
 0x245   :  { %v505_v48 = vmul.f32 %v1119_v19, %v477_v36  ;;  %v506_v55 = vmul.f32 %v1127_v29, %v478_v47 }
 0x246   :  { %v697_v17 = vpop.eup %696 }
 0x247   :  { %v699_v51 = vpop.eup %698  ;;  %v533_v56 = vadd.f32 %v1122_v24, %v505_v48  ;;  %v534_v57 = vadd.f32 %v1134_v33, %v506_v55  ;;  %v479_v6 = vmul.f32 %v697_v17, %v447_v20  ;;  %v480_v58 = vmul.f32 %v697_v17, %v448_v22 }
 0x248   :  { %v485_v59 = vmul.f32 %v699_v51, %v453_v37  ;;  %v486_v7 = vmul.f32 %v699_v51, %v454_v49 }
 0x249   :  { %549 = vst [vmem:[#allocation13 + $0x20] sm:$0xff] %v533_v56  ;;  %550 = vst [vmem:[#allocation13 + $0x28] sm:$0xff] %v534_v57  ;;  %v507_v26 = vmul.f32 %v1119_v19, %v479_v6  ;;  %v508_v60 = vmul.f32 %v1127_v29, %v480_v58 }
 0x24a   :  { %v513_v30 = vmul.f32 %v1119_v19, %v485_v59  ;;  %v514_v61 = vmul.f32 %v1127_v29, %v486_v7 }
 0x24b   :  { %v701_v62 = vpop.eup %700  ;;  %v535_v63 = vadd.f32 %v1122_v24, %v507_v26  ;;  %v536_v9 = vadd.f32 %v1134_v33, %v508_v60 }
 0x24c   :  { %v541_v5 = vadd.f32 %v1122_v24, %v513_v30  ;;  %v542_v8 = vadd.f32 %v1134_v33, %v514_v61  ;;  %v487_v16 = vmul.f32 %v701_v62, %v455_v0  ;;  %v488_v40 = vmul.f32 %v701_v62, %v456_v1 }
 0x24d   :  { %551 = vst [vmem:[#allocation13 + $0x30] sm:$0xff] %v535_v63  ;;  %552 = vst [vmem:[#allocation13 + $0x38] sm:$0xff] %v536_v9 }
 0x24e   :  { %557 = vst [vmem:[#allocation13 + $0x60] sm:$0xff] %v541_v5  ;;  %558 = vst [vmem:[#allocation13 + $0x68] sm:$0xff] %v542_v8  ;;  %v515_v13 = vmul.f32 %v1119_v19, %v487_v16  ;;  %v516_v14 = vmul.f32 %v1127_v29, %v488_v40 }
 0x250   :  { %v543_v42 = vadd.f32 %v1122_v24, %v515_v13  ;;  %v544_v10 = vadd.f32 %v1134_v33, %v516_v14 }
 0x252   :  { %559 = vst [vmem:[#allocation13 + $0x70] sm:$0xff] %v543_v42  ;;  %560 = vst [vmem:[#allocation13 + $0x78] sm:$0xff] %v544_v10 }
 0x253   :  { %845 = shalt.err (!%p842_p10)
}
 0x254   :  { %s846_s22 = scalar_lea.hbm %s1227_s6, 2048 }
 0x255   :  { %p847_p11 = scmp.ne.s32.totalorder %s1227_s6, %s846_s22  ;;  %p850_p12 = scmp.lt.u32.totalorder %s846_s22, %s1227_s6 }
 0x257   :  { %p852_p13 = pnand %p850_p12, %p847_p11 }
 0x259   :  { %855 = shalt.err (!%p852_p13)
}
 0x25a   :  { %572 = dma.vmem_to_hbm [thread:$0]  %s567_s20, 2048, %s1227_s6, [#allocation4], %s868_s9, %s868_s9, %s869_s10  }
 0x25b   :  { %864 = dma.done.wait [#allocation4], 2048  }
 0x25c   :  { %865 = vsyncadd [#allocation4], 4294965248 }
 0x25d   :  { %576 = vsyncpa [#allocation3], 1 }
 0x25e   :  { %577 = vsyncpa [#allocation6], 1 }
 0x25f   :  { %578 = vsyncpa [#allocation9], 1 }
 0x260   :  { %579 = vsyncpa [#allocation12], 1 }
 0x261   :  { %580 = vsyncpa [#allocation4], 1 }

</bundles_post_ra>
